<compile_context>
chip_gen: v7x
topology: tpu7x:2x2x1
jax: 0.10.0
libtpu: 0.0.40
codegen_flags: <defaults>
</compile_context>

<pallas_src>
import functools
import math

import numpy as np
import jax
import jax.numpy as jnp
from jax import lax
from jax.experimental import pallas as pl
from jax.experimental.pallas import tpu as pltpu

_MiB = 1024 * 1024


def _itemsize(dt):
    return np.dtype(dt).itemsize


def _vmem_limit(est_bytes):
    # Raise the scoped-VMEM default (16 MiB v5e / 32 MiB v6e, v7x) but stay at
    # or under 64 MiB so the same setting is safe on v7x (64 MiB physical).
    return int(min(64 * _MiB, max(32 * _MiB, 2 * est_bytes)))


def _norm_f32(xf, g_ref, beta_ref, norm, eps):
    """Row-wise RMSNorm / LayerNorm in f32.

    NOTE: on a partial last row tile the Pallas-padded garbage rows are
    normalized too; they are masked on store and no cross-row reduction ever
    reads them, so results stay correct.
    """
    inv_k = 1.0 / xf.shape[-1]          # folded constant (sum * 1/K)
    g = g_ref[...].astype(jnp.float32)  # (1, K), broadcasts over rows
    if norm == "rms":
        ms = jnp.sum(xf * xf, axis=-1, keepdims=True) * inv_k
        return xf * lax.rsqrt(ms + eps) * g
    mu = jnp.sum(xf, axis=-1, keepdims=True) * inv_k
    xc = xf - mu
    var = jnp.sum(xc * xc, axis=-1, keepdims=True) * inv_k
    return xc * lax.rsqrt(var + eps) * g + beta_ref[...].astype(jnp.float32)


def _activate(y, activation):
    if activation == "relu":
        return jnp.maximum(y, 0.0)
    if activation == "silu":
        return y * jax.nn.sigmoid(y)
    if activation == "gelu":
        return jax.nn.gelu(y)
    return y


# -----------------------------------------------------------------------------
# Fused (norm ->) matmul (-> bias -> activation -> residual) kernel
# -----------------------------------------------------------------------------

def _fused_linear_kernel(*refs, norm, eps, activation, has_norm, has_residual,
                         compute_dtype):
    idx = 0
    x_ref = refs[idx]; idx += 1
    w_ref = refs[idx]; idx += 1
    b_ref = refs[idx]; idx += 1
    g_ref = beta_ref = r_ref = None
    if has_norm:
        g_ref = refs[idx]; idx += 1
        beta_ref = refs[idx]; idx += 1
    if has_residual:
        r_ref = refs[idx]; idx += 1
    o_ref = refs[idx]

    x = x_ref[...]
    if has_norm:
        # With the (cols-outer, rows-inner) grid the norm is recomputed once
        # per output-column block.  It is VPU/EUP-only work that overlaps the
        # HBM-bound weight streaming, which is what we trade for keeping each
        # (K, tn) weight block resident across the whole row sweep.
        x = _norm_f32(x.astype(jnp.float32), g_ref, beta_ref, norm,
                      eps).astype(x_ref.dtype)

    if compute_dtype is not None:
        lhs, rhs = x.astype(compute_dtype), w_ref[...].astype(compute_dtype)
    else:
        lhs, rhs = x, w_ref[...]
    y = jnp.dot(lhs, rhs, preferred_element_type=jnp.float32)
    y = y + b_ref[...].astype(jnp.float32)
    y = _activate(y, activation)
    if has_residual:
        y = y + r_ref[...].astype(jnp.float32)
    o_ref[...] = y.astype(o_ref.dtype)


def fused_linear(x, w, b, *, gamma=None, beta=None, norm=None, eps=1e-5,
                 activation=None, residual=None, tile_m=256, tile_n=512,
                 compute_dtype=None, out_dtype=None):
    """out = activation(norm(x) @ w + b) (+ residual);  x:(M,K)  w:(K,N)."""
    M, K = x.shape
    Kw, N = w.shape
    assert K == Kw
    out_dtype = out_dtype or x.dtype

    tm = M if M <= tile_m else tile_m        # tile_m multiple of 8 (sublane)
    tn = N if N <= tile_n else tile_n        # tile_n multiple of 128 (lane-dense)
    # Cols-outer / rows-inner grid: the (K, tn) weight block index is constant
    # across the inner row axis, so each weight block is DMA'd exactly once.
    grid = (pl.cdiv(N, tn), pl.cdiv(M, tm))

    inputs = [x, w, b.reshape(1, N)]
    in_specs = [
        pl.BlockSpec((tm, K), lambda j, i: (i, 0)),
        pl.BlockSpec((K, tn), lambda j, i: (0, j)),
        pl.BlockSpec((1, tn), lambda j, i: (0, j)),
    ]
    if norm is not None:
        if beta is None:
            beta = jnp.zeros_like(gamma)
        inputs += [gamma.reshape(1, K), beta.reshape(1, K)]
        in_specs += [pl.BlockSpec((1, K), lambda j, i: (0, 0)),
                     pl.BlockSpec((1, K), lambda j, i: (0, 0))]
    if residual is not None:
        inputs.append(residual)
        in_specs.append(pl.BlockSpec((tm, tn), lambda j, i: (i, j)))

    kernel = functools.partial(
        _fused_linear_kernel, norm=norm, eps=eps, activation=activation,
        has_norm=norm is not None, has_residual=residual is not None,
        compute_dtype=compute_dtype)

    xb, wb, ob = _itemsize(x.dtype), _itemsize(w.dtype), _itemsize(out_dtype)
    block_bytes = (tm * K * xb + K * tn * wb + tn * xb + tm * tn * ob
                   + (2 * K * xb if norm is not None else 0)
                   + (tm * tn * xb if residual is not None else 0))
    est = 2 * block_bytes + 4 * tm * tn + 4 * tm * K
    cost = pl.CostEstimate(
        flops=2 * M * K * N,
        transcendentals=M if norm is not None else 0,
        bytes_accessed=(M * K * xb + K * N * wb + N * xb + M * N * ob
                        + (2 * K * xb if norm is not None else 0)
                        + (M * N * xb if residual is not None else 0)))

    # TODO(synk): for very large K (full-K blocks no longer fit scoped VMEM)
    # add a K-reduction grid axis with an f32 VMEM accumulator.
    return pl.pallas_call(
        kernel,
        out_shape=jax.ShapeDtypeStruct((M, N), out_dtype),
        grid_spec=pltpu.PrefetchScalarGridSpec(
            num_scalar_prefetch=0,
            grid=grid,
            in_specs=in_specs,
            out_specs=pl.BlockSpec((tm, tn), lambda j, i: (i, j)),
        ),
        compiler_params=pltpu.CompilerParams(
            dimension_semantics=("parallel", "parallel"),
            vmem_limit_bytes=_vmem_limit(est)),
        cost_estimate=cost,
    )(*inputs)


# -----------------------------------------------------------------------------
# Fused MLP kernel:  out = x + act(norm(x) @ w1 + b1) @ w2 + b2
# Used for both the FFN block and the adapter (down/up) block; the hidden
# activation never leaves VMEM.
# -----------------------------------------------------------------------------

def _fused_mlp_kernel(x_ref, g_ref, beta_ref, w1_ref, b1_ref, w2_ref, b2_ref,
                      o_ref, *, norm, eps, activation, compute_dtype):
    xf = x_ref[...].astype(jnp.float32)
    xn = _norm_f32(xf, g_ref, beta_ref, norm, eps)

    if compute_dtype is not None:
        lhs1, rhs1 = xn.astype(compute_dtype), w1_ref[...].astype(compute_dtype)
    else:
        lhs1, rhs1 = xn.astype(x_ref.dtype), w1_ref[...]
    h = jnp.dot(lhs1, rhs1, preferred_element_type=jnp.float32)
    h = _activate(h + b1_ref[...].astype(jnp.float32), activation)

    if compute_dtype is not None:
        lhs2, rhs2 = h.astype(compute_dtype), w2_ref[...].astype(compute_dtype)
    else:
        lhs2, rhs2 = h.astype(w2_ref.dtype), w2_ref[...]
    y = jnp.dot(lhs2, rhs2, preferred_element_type=jnp.float32)
    y = y + b2_ref[...].astype(jnp.float32) + xf          # residual = raw input
    o_ref[...] = y.astype(o_ref.dtype)


def fused_mlp(x, w1, b1, w2, b2, *, gamma, beta, norm, eps, activation,
              tile_m=256, compute_dtype=None, out_dtype=None,
              fuse_vmem_budget=24 * _MiB):
    """x:(M,K)  w1:(K,F)  w2:(F,K).  Falls back to two fused_linear calls when
    the resident weights + hidden tile would not fit the VMEM budget."""
    M, K = x.shape
    F = w1.shape[1]
    assert w1.shape[0] == K and w2.shape == (F, K)
    out_dtype = out_dtype or x.dtype
    tm = M if M <= tile_m else tile_m

    xb, w1b, w2b = _itemsize(x.dtype), _itemsize(w1.dtype), _itemsize(w2.dtype)
    ob = _itemsize(out_dtype)
    est = (2 * (tm * K * xb + tm * K * ob)                        # streamed blocks
           + 2 * (K * F * w1b + F * K * w2b + (F + 4 * K) * xb)   # resident weights
           + 4 * tm * F + 8 * tm * K)                             # f32 hidden + temps
    if est > fuse_vmem_budget:
        h = fused_linear(x, w1, b1, gamma=gamma, beta=beta, norm=norm, eps=eps,
                         activation=activation, compute_dtype=compute_dtype)
        return fused_linear(h, w2, b2, residual=x, compute_dtype=compute_dtype,
                            out_dtype=out_dtype)

    kernel = functools.partial(_fused_mlp_kernel, norm=norm, eps=eps,
                               activation=activation, compute_dtype=compute_dtype)
    cost = pl.CostEstimate(
        flops=4 * M * K * F,
        transcendentals=M,
        bytes_accessed=(M * K * (xb + ob) + K * F * w1b + F * K * w2b
                        + (F + 3 * K) * xb))
    return pl.pallas_call(
        kernel,
        out_shape=jax.ShapeDtypeStruct((M, K), out_dtype),
        grid_spec=pltpu.PrefetchScalarGridSpec(
            num_scalar_prefetch=0,
            grid=(pl.cdiv(M, tm),),
            in_specs=[
                pl.BlockSpec((tm, K), lambda i: (i, 0)),
                pl.BlockSpec((1, K), lambda i: (0, 0)),
                pl.BlockSpec((1, K), lambda i: (0, 0)),
                pl.BlockSpec((K, F), lambda i: (0, 0)),   # resident across rows
                pl.BlockSpec((1, F), lambda i: (0, 0)),
                pl.BlockSpec((F, K), lambda i: (0, 0)),   # resident across rows
                pl.BlockSpec((1, K), lambda i: (0, 0)),
            ],
            out_specs=pl.BlockSpec((tm, K), lambda i: (i, 0)),
        ),
        compiler_params=pltpu.CompilerParams(
            dimension_semantics=("parallel",),
            vmem_limit_bytes=_vmem_limit(est)),
        cost_estimate=cost,
    )(x, gamma.reshape(1, K), beta.reshape(1, K),
      w1, b1.reshape(1, F), w2, b2.reshape(1, K))


# -----------------------------------------------------------------------------
# Attention core: softmax(q k^T / sqrt(d)) v, consuming the joint QKV tensor
# directly (no wrapper-side split / head transposes).
# -----------------------------------------------------------------------------

def _attention_kernel(qkv_q_ref, qkv_kv_ref, o_ref, *, num_heads, scale):
    D = o_ref.shape[-1]
    hd = D // num_heads
    q_all = qkv_q_ref[0].astype(jnp.float32)      # (tq, 3D) — only [:, :D] used
    kv_all = qkv_kv_ref[0].astype(jnp.float32)    # (S, 3D)
    k_all = kv_all[:, D:2 * D]
    v_all = kv_all[:, 2 * D:3 * D]
    outs = []
    # Static unroll over heads: all heads per grid step -> the stored output
    # tile is D lanes wide (lane-dense) and per-step overhead is amortized.
    for h in range(num_heads):
        sl = slice(h * hd, (h + 1) * hd)
        q = q_all[:, sl] * scale                  # scale folded into q (T*hd muls)
        k = k_all[:, sl]
        v = v_all[:, sl]
        s = lax.dot_general(q, k, (((1,), (1,)), ((), ())),
                            preferred_element_type=jnp.float32)   # (tq, S)
        m = jnp.max(s, axis=-1, keepdims=True)
        p = jnp.exp(s - m)
        p = p * pl.reciprocal(jnp.sum(p, axis=-1, keepdims=True), approx=True)
        outs.append(jnp.dot(p, v, preferred_element_type=jnp.float32))
    o_ref[0] = jnp.concatenate(outs, axis=-1).astype(o_ref.dtype)


def attention_core(qkv, *, num_heads, scale, tile_q=256, out_dtype=None):
    """qkv:(B, T, 3*D) with columns [q | k | v] -> (B, T, D)."""
    B, T, D3 = qkv.shape
    assert D3 % 3 == 0
    D = D3 // 3
    out_dtype = out_dtype or qkv.dtype
    tq = T if T <= tile_q else (tile_q // 8) * 8
    grid = (B, pl.cdiv(T, tq))

    xb, ob = _itemsize(qkv.dtype), _itemsize(out_dtype)
    est = 2 * (tq * D3 * xb + T * D3 * xb + tq * D * ob) + 4 * (tq * T + tq * D)
    cost = pl.CostEstimate(
        flops=4 * B * T * T * D,
        transcendentals=B * num_heads * T * T,
        bytes_accessed=2 * B * T * D3 * xb + B * T * D * ob)

    # TODO(synk): for long sequences switch to a flash-style online-softmax
    # kernel with a KV grid axis instead of materializing (tq, S) scores;
    # padding_mask / causal mask / RoPE / incremental KV-cache branches of
    # MultiheadAttention are inactive under the default config and omitted.
    return pl.pallas_call(
        functools.partial(_attention_kernel, num_heads=num_heads, scale=scale),
        out_shape=jax.ShapeDtypeStruct((B, T, D), out_dtype),
        grid_spec=pltpu.PrefetchScalarGridSpec(
            num_scalar_prefetch=0,
            grid=grid,
            in_specs=[pl.BlockSpec((1, tq, D3), lambda b, qi: (b, qi, 0)),
                      pl.BlockSpec((1, T, D3), lambda b, qi: (b, 0, 0))],
            out_specs=pl.BlockSpec((1, tq, D), lambda b, qi: (b, qi, 0)),
        ),
        compiler_params=pltpu.CompilerParams(
            dimension_semantics=("parallel", "arbitrary"),
            vmem_limit_bytes=_vmem_limit(est)),
        cost_estimate=cost,
    )(qkv, qkv)


# -----------------------------------------------------------------------------
# Full AdapterTransformerEncoderLayer forward
# -----------------------------------------------------------------------------

def adapter_transformer_encoder_layer(params, x, *, num_heads, eps=1e-5,
                                      rms_norm=True, activation="relu",
                                      use_adapter=True, compute_dtype=None):
    B, T, D = x.shape
    hd = D // num_heads
    norm_kind = "rms" if rms_norm else "layer"
    x2 = x.reshape(B * T, D)

    # --- self-attention: pre-norm fused into the joint QKV projection ---
    qkv = fused_linear(x2, params["w_qkv"], params["b_qkv"],
                       gamma=params["attn_ln_w"], beta=params["attn_ln_b"],
                       norm=norm_kind, eps=eps, compute_dtype=compute_dtype)
    attn = attention_core(qkv.reshape(B, T, 3 * D), num_heads=num_heads,
                          scale=1.0 / math.sqrt(hd))
    # out_proj with the residual add fused in-kernel
    x_attn = fused_linear(attn.reshape(B * T, D), params["w_out"],
                          params["b_out"], residual=x2,
                          compute_dtype=compute_dtype)

    # --- feed-forward: norm -> fc1 -> act -> fc2 -> residual, fully fused
    #     when the resident weights / hidden tile fit VMEM ---
    # TODO(synk): swiglu (fc3) branch not implemented (default activation='relu').
    x_ffn = fused_mlp(x_attn, params["w_fc1"], params["b_fc1"],
                      params["w_fc2"], params["b_fc2"],
                      gamma=params["ffn_ln_w"], beta=params["ffn_ln_b"],
                      norm=norm_kind, eps=eps, activation=activation,
                      compute_dtype=compute_dtype)

    # --- adapter: LN -> down -> ReLU -> up -> residual in ONE kernel; the
    #     (rows, adapter_dim) intermediate never hits HBM ---
    x_out = x_ffn
    if use_adapter:
        x_out = fused_mlp(x_ffn, params["w_down"], params["b_down"],
                          params["w_up"], params["b_up"],
                          gamma=params["ad_ln_w"], beta=params["ad_ln_b"],
                          norm="layer", eps=1e-5, activation="relu",
                          compute_dtype=compute_dtype)

    return x_out.reshape(B, T, D)


# -----------------------------------------------------------------------------
# Deterministic params, pure-JAX reference, self-test
# -----------------------------------------------------------------------------

def init_params(key, D, ffn_dim, adapter_dim, dtype=jnp.float32):
    ks = jax.random.split(key, 12)

    def xavier(k, fan_in, fan_out, gain=1.0):
        lim = gain * math.sqrt(6.0 / (fan_in + fan_out))
        return jax.random.uniform(k, (fan_in, fan_out), dtype, -lim, lim)

    def bias(k, n, fan_in):
        lim = 1.0 / math.sqrt(fan_in)
        return jax.random.uniform(k, (n,), dtype, -lim, lim)

    wq = xavier(ks[0], D, D, 1.0 / math.sqrt(2))
    wk = xavier(ks[1], D, D, 1.0 / math.sqrt(2))
    wv = xavier(ks[2], D, D, 1.0 / math.sqrt(2))
    wo = xavier(ks[3], D, D)
    bqkv = jnp.concatenate([bias(ks[4], D, D), bias(ks[5], D, D),
                            bias(ks[6], D, D)])

    return dict(
        attn_ln_w=jnp.ones((D,), dtype), attn_ln_b=jnp.zeros((D,), dtype),
        w_qkv=jnp.concatenate([wq, wk, wv], axis=1), b_qkv=bqkv,
        w_out=wo, b_out=jnp.zeros((D,), dtype),
        ffn_ln_w=jnp.ones((D,), dtype), ffn_ln_b=jnp.zeros((D,), dtype),
        w_fc1=xavier(ks[7], D, ffn_dim), b_fc1=bias(ks[8], ffn_dim, D),
        w_fc2=xavier(ks[9], ffn_dim, D), b_fc2=bias(ks[10], D, ffn_dim),
        # AdapterLayer init: weights ~ U(-1e-6, 1e-6), zero biases, LN ones/zeros.
        ad_ln_w=jnp.ones((D,), dtype), ad_ln_b=jnp.zeros((D,), dtype),
        w_down=jax.random.uniform(ks[11], (D, adapter_dim), dtype, -1e-6, 1e-6),
        b_down=jnp.zeros((adapter_dim,), dtype),
        w_up=jax.random.uniform(jax.random.fold_in(key, 99),
                                (adapter_dim, D), dtype, -1e-6, 1e-6),
        b_up=jnp.zeros((D,), dtype),
    )


def ref_forward(params, x, *, num_heads, eps=1e-5, rms_norm=True,
                use_adapter=True):
    B, T, D = x.shape
    H = num_heads
    hd = D // H
    hp = lax.Precision.HIGHEST
    dot = functools.partial(jnp.dot, precision=hp)

    def rmsnorm(t, w):
        tf = t.astype(jnp.float32)
        return (tf * lax.rsqrt(jnp.mean(tf * tf, -1, keepdims=True) + eps)
                * w.astype(jnp.float32)).astype(t.dtype)

    def layernorm(t, w, b, e):
        tf = t.astype(jnp.float32)
        mu = jnp.mean(tf, -1, keepdims=True)
        var = jnp.mean((tf - mu) ** 2, -1, keepdims=True)
        return ((tf - mu) * lax.rsqrt(var + e) * w.astype(jnp.float32)
                + b.astype(jnp.float32)).astype(t.dtype)

    def norm(t, w, b):
        return rmsnorm(t, w) if rms_norm else layernorm(t, w, b, eps)

    x2 = x.reshape(B * T, D)
    xn = norm(x2, params["attn_ln_w"], params["attn_ln_b"])
    qkv = dot(xn, params["w_qkv"]) + params["b_qkv"]
    q, k, v = jnp.split(qkv, 3, axis=-1)
    q = q.reshape(B, T, H, hd).transpose(0, 2, 1, 3)
    k = k.reshape(B, T, H, hd).transpose(0, 2, 1, 3)
    v = v.reshape(B, T, H, hd).transpose(0, 2, 1, 3)
    s = jnp.einsum("bhtd,bhsd->bhts", q, k, precision=hp) / math.sqrt(hd)
    p = jax.nn.softmax(s.astype(jnp.float32), axis=-1)
    attn = jnp.einsum("bhts,bhsd->bhtd", p, v.astype(jnp.float32), precision=hp)
    attn = attn.astype(x.dtype).transpose(0, 2, 1, 3).reshape(B * T, D)
    x_attn = dot(attn, params["w_out"]) + params["b_out"] + x2

    hn = norm(x_attn, params["ffn_ln_w"], params["ffn_ln_b"])
    hh = jnp.maximum(dot(hn, params["w_fc1"]) + params["b_fc1"], 0.0)
    x_out = dot(hh, params["w_fc2"]) + params["b_fc2"] + x_attn

    if use_adapter:
        an = layernorm(x_out, params["ad_ln_w"], params["ad_ln_b"], 1e-5)
        ad = jnp.maximum(dot(an, params["w_down"]) + params["b_down"], 0.0)
        x_out = dot(ad, params["w_up"]) + params["b_up"] + x_out

    return x_out.reshape(B, T, D)


if __name__ == "__main__":
    key = jax.random.PRNGKey(0)
    k_param, k_x = jax.random.split(key)

    batch, seq, embed_dim, num_heads = 2, 8, 32, 4
    ffn_dim, adapter_dim = 64, 16

    params = init_params(k_param, embed_dim, ffn_dim, adapter_dim)
    x = jax.random.normal(k_x, (batch, seq, embed_dim), dtype=jnp.float32)

    out = adapter_transformer_encoder_layer(
        params, x, num_heads=num_heads, rms_norm=True, use_adapter=True)
    out = jax.block_until_ready(out)

    ref = ref_forward(params, x, num_heads=num_heads, rms_norm=True,
                      use_adapter=True)

    assert out.shape == x.shape and out.dtype == x.dtype
    assert bool(jnp.allclose(out, ref, atol=1e-2, rtol=1e-2)), (
        "max abs err = %f" % float(jnp.max(jnp.abs(out - ref))))

    print("KERNEL_OK")
</pallas_src>

<mosaic_0001>
module attributes {stable_mosaic.version = 11 : i64} {
  func.func @_fused_linear_kernel(%arg0: i32, %arg1: i32, %arg2: memref<16x32xf32, #tpu.memory_space<vmem>>, %arg3: memref<32x96xf32, #tpu.memory_space<vmem>>, %arg4: memref<1x96xf32, #tpu.memory_space<vmem>>, %arg5: memref<1x32xf32, #tpu.memory_space<vmem>>, %arg6: memref<1x32xf32, #tpu.memory_space<vmem>>, %arg7: memref<16x96xf32, #tpu.memory_space<vmem>>) attributes {dimension_semantics = [#tpu.dimension_semantics<parallel>, #tpu.dimension_semantics<parallel>], iteration_bounds = array<i64: 1, 1>, scalar_prefetch = 0 : i64, scratch_operands = 0 : i64, tpu.core_type = #tpu.core_type<tc>, window_params = [{transform_indices = @transform_0, window_bounds = array<i64: 16, 32>}, {transform_indices = @transform_1, window_bounds = array<i64: 32, 96>}, {transform_indices = @transform_2, window_bounds = array<i64: 1, 96>}, {pipeline_mode = #tpu.pipeline_mode<synchronous>, transform_indices = @transform_3, window_bounds = array<i64: 1, 32>}, {pipeline_mode = #tpu.pipeline_mode<synchronous>, transform_indices = @transform_4, window_bounds = array<i64: 1, 32>}, {transform_indices = @transform_5, window_bounds = array<i64: 16, 96>}]} {
    %c0 = arith.constant 0 : index
    %c0_0 = arith.constant 0 : index
    %0 = vector.load %arg2[%c0, %c0_0] : memref<16x32xf32, #tpu.memory_space<vmem>>, vector<16x32xf32>
    %c0_1 = arith.constant 0 : index
    %c0_2 = arith.constant 0 : index
    %1 = vector.load %arg5[%c0_1, %c0_2] : memref<1x32xf32, #tpu.memory_space<vmem>>, vector<1x32xf32>
    %2 = arith.mulf %0, %0 : vector<16x32xf32>
    %cst = arith.constant dense<0.000000e+00> : vector<16xf32>
    %3 = vector.multi_reduction <add>, %2, %cst [1] : vector<16x32xf32> to vector<16xf32>
    %4 = vector.shape_cast %3 : vector<16xf32> to vector<16x1xf32>
    %cst_3 = arith.constant 3.125000e-02 : f32
    %5 = vector.broadcast %cst_3 : f32 to vector<16x1xf32>
    %6 = arith.mulf %4, %5 : vector<16x1xf32>
    %cst_4 = arith.constant 9.99999974E-6 : f32
    %7 = vector.broadcast %cst_4 : f32 to vector<16x1xf32>
    %8 = arith.addf %6, %7 : vector<16x1xf32>
    %9 = math.rsqrt %8 : vector<16x1xf32>
    %10 = vector.broadcast %9 : vector<16x1xf32> to vector<16x32xf32>
    %11 = arith.mulf %0, %10 : vector<16x32xf32>
    %12 = vector.broadcast %1 : vector<1x32xf32> to vector<16x32xf32>
    %13 = arith.mulf %11, %12 : vector<16x32xf32>
    %c0_5 = arith.constant 0 : index
    %c0_6 = arith.constant 0 : index
    %14 = vector.load %arg3[%c0_5, %c0_6] : memref<32x96xf32, #tpu.memory_space<vmem>>, vector<32x96xf32>
    %cst_7 = arith.constant dense<0.000000e+00> : vector<16x96xf32>
    %15 = tpu.matmul %13, %14, %cst_7 {dimension_numbers = #tpu.dot_dimension_numbers<[1], [0], [0], [1], [0, 0, 1, 1], [], []>} : vector<16x32xf32>, vector<32x96xf32>, vector<16x96xf32> -> vector<16x96xf32>
    %c0_8 = arith.constant 0 : index
    %c0_9 = arith.constant 0 : index
    %16 = vector.load %arg4[%c0_8, %c0_9] : memref<1x96xf32, #tpu.memory_space<vmem>>, vector<1x96xf32>
    %17 = vector.broadcast %16 : vector<1x96xf32> to vector<16x96xf32>
    %18 = arith.addf %15, %17 : vector<16x96xf32>
    %c0_10 = arith.constant 0 : index
    %c0_11 = arith.constant 0 : index
    %19 = vector.load %arg7[%c0_10, %c0_11] : memref<16x96xf32, #tpu.memory_space<vmem>>, vector<16x96xf32>
    tpu.vector_store %arg7[%c0_10, %c0_11], %18 {strides = array<i32>} : memref<16x96xf32, #tpu.memory_space<vmem>>, vector<16x96xf32>,
    return
  }
  func.func @transform_0(%arg0: i32, %arg1: i32) -> (i32, i32) {
    %c0_i32 = arith.constant 0 : i32
    %c0_i32_0 = arith.constant 0 : i32
    return %arg1, %c0_i32 : i32, i32
  }
  func.func @transform_1(%arg0: i32, %arg1: i32) -> (i32, i32) {
    %c0_i32 = arith.constant 0 : i32
    %c0_i32_0 = arith.constant 0 : i32
    return %c0_i32, %arg0 : i32, i32
  }
  func.func @transform_2(%arg0: i32, %arg1: i32) -> (i32, i32) {
    %c0_i32 = arith.constant 0 : i32
    %c0_i32_0 = arith.constant 0 : i32
    return %c0_i32, %arg0 : i32, i32
  }
  func.func @transform_3(%arg0: i32, %arg1: i32) -> (i32, i32) {
    %c0_i32 = arith.constant 0 : i32
    %c0_i32_0 = arith.constant 0 : i32
    %c0_i32_1 = arith.constant 0 : i32
    return %c0_i32, %c0_i32_0 : i32, i32
  }
  func.func @transform_4(%arg0: i32, %arg1: i32) -> (i32, i32) {
    %c0_i32 = arith.constant 0 : i32
    %c0_i32_0 = arith.constant 0 : i32
    %c0_i32_1 = arith.constant 0 : i32
    return %c0_i32, %c0_i32_0 : i32, i32
  }
  func.func @transform_5(%arg0: i32, %arg1: i32) -> (i32, i32) {
    %c0_i32 = arith.constant 0 : i32
    return %arg1, %arg0 : i32, i32
  }
}

</mosaic_0001>

<bundles_post_ra>
// kernel: tpu_custom_call.1
= control target key start
LH: loop header
LB: loop body
LE: loop exit
PB: predicated region body
PF: predicated region fallthrough
CT: control target
= control target key end

     0   :  { %10 = vsyncpa [#allocation3], 0  ;;  %s390_s0 = inlined_call_operand.hbm [shape: f32[16,32], index: 0, kind: input, shape index: {}]   ;;  %s391_s1 = inlined_call_operand.hbm [shape: f32[32,96], index: 1, kind: input, shape index: {}]   ;;  %s392_s2 = inlined_call_operand.vmem [shape: f32[1,96], index: 2, kind: input, shape index: {}]   ;;  %s393_s3 = inlined_call_operand.vmem [shape: f32[1,32], index: 3, kind: input, shape index: {}]   ;;  %s394_s4 = inlined_call_operand.vmem [shape: f32[1,32], index: 4, kind: input, shape index: {}]   ;;  %s395_s5 = inlined_call_operand.hbm [shape: f32[16,96], index: 5, kind: output, shape index: {}]  }
   0x1   :  { %11 = vsyncpa [#allocation6], 0 }
   0x2   :  { %12 = vsyncpa [#allocation4], 0  ;;  %s300_s18 = smov [#allocation2]   ;;  %s228_s22 = scalar_lea.hbm %s390_s0, 256 }
   0x3   :  { %s18_s19 = sshll.u32 %s300_s18, 4  ;;  %p229_p0 = scmp.ne.s32.totalorder %s390_s0, %s228_s22  ;;  %s19_s19 = int_to_ptr.vmem [resolvable:$true] %s18_s19 }
   0x4   :  { %p232_p1 = scmp.lt.u32.totalorder %s228_s22, %s390_s0 }
   0x6   :  { %p234_p2 = pnand %p232_p1, %p229_p0 }
   0x8   :  { %237 = shalt.err (!%p234_p2)
}
   0x9   :  { %s238_s4 = scalar_lea.vmem %s19_s19, 256  ;;  %p243_p4 = scmp.lt.s32.totalorder %s19_s19, %s19_s19 }
   0xa   :  { %p239_p3 = scmp.ne.s32.totalorder %s19_s19, %s238_s4  ;;  %p244_p5 = scmp.lt.s32.totalorder %s238_s4, %s238_s4 }
   0xc   :  { %p245_p6 = por %p244_p5, %p243_p4 }
   0xe   :  { %p246_p7 = pnand %p245_p6, %p239_p3 }
  0x10   :  { %249 = shalt.err (!%p246_p7)
}
  0x11   :  { %s301_s27 = smov 128   ;;  %s302_s28 = smov 8  }
  0x12   :  { %24 = dma.hbm_to_vmem [thread:$0]  %s390_s0, 256, %s19_s19, [#allocation3], %s301_s27, %s301_s27, %s302_s28  }
  0x13   :  { %s303_s6 = smov [#allocation5]   ;;  %s250_s10 = scalar_lea.hbm %s391_s1, 512 }
  0x14   :  { %s30_s7 = sshll.u32 %s303_s6, 4  ;;  %p251_p8 = scmp.ne.s32.totalorder %s391_s1, %s250_s10  ;;  %s31_s7 = int_to_ptr.vmem [resolvable:$true] %s30_s7 }
  0x15   :  { %p254_p9 = scmp.lt.u32.totalorder %s250_s10, %s391_s1 }
  0x17   :  { %p256_p10 = pnand %p254_p9, %p251_p8 }
  0x19   :  { %259 = shalt.err (!%p256_p10)
}
  0x1a   :  { %s260_s15 = scalar_lea.vmem %s31_s7, 512  ;;  %p265_p12 = scmp.lt.s32.totalorder %s31_s7, %s31_s7 }
  0x1b   :  { %p261_p11 = scmp.ne.s32.totalorder %s31_s7, %s260_s15  ;;  %p266_p13 = scmp.lt.s32.totalorder %s260_s15, %s260_s15 }
  0x1d   :  { %p267_p0 = por %p266_p13, %p265_p12 }
  0x1f   :  { %p268_p1 = pnand %p267_p0, %p261_p11 }
  0x21   :  { %271 = shalt.err (!%p268_p1)
}
  0x22   :  { %36 = dma.hbm_to_vmem [thread:$0]  %s391_s1, 512, %s31_s7, [#allocation6], %s301_s27, %s301_s27, %s302_s28  }
  0x23   :  { %294 = dma.done.wait [#allocation3], 256  }
  0x24   :  { %295 = vsyncadd [#allocation3], 4294967040 }
  0x25   :  { %296 = dma.done.wait [#allocation6], 512  }
  0x26   :  { %297 = vsyncadd [#allocation6], 4294966784  ;;  %v49_v0 = vld [vmem:[#allocation2] sm:$0xff]  ;;  %vm54_vm0 = vcmask 261120   ;;  %v50_v1 = vld [vmem:[#allocation2 + $0x8] sm:$0xff]  ;;  %s304_s20 = smov [#allocation7]  }
  0x27   :  { %v52_v2 = vmul.f32 %v49_v0, %v49_v0  ;;  %v53_v3 = vmul.f32 %v50_v1, %v50_v1  ;;  %v77_v6 = vld [vmem:[#allocation5] sm:$0xff]  ;;  %v78_v7 = vld [vmem:[#allocation5 + $0x8] sm:$0xff]  ;;  %v79_v8 = vld [vmem:[#allocation5 + $0x10] sm:$0xff]  ;;  %s177_s21 = sshll.u32 %s304_s20, 4  ;;  %vm169_vm1 = vcmask 785408   ;;  %s178_s21 = int_to_ptr.vmem [resolvable:$true] %s177_s21 }
  0x28   :  { %v211_v9 = vpack.c.bf16 %v78_v7, %v77_v6  ;;  %v80_v10 = vld [vmem:[#allocation5 + $0x18] sm:$0xff]  ;;  %v190_v19 = vld [vmem:[%s393_s3] ss:$0 sm:$0xff]  ;;  %s272_s3 = scalar_lea.vmem %s178_s21, 256  ;;  %p277_p3 = scmp.lt.s32.totalorder %s178_s21, %s178_s21 }
  0x29   :  { %v55_v4 = vsel %vm54_vm0, %v52_v2, 0.0  ;;  %v58_v5 = vsel %vm54_vm0, %v53_v3, 0.0  ;;  %v215_v11 = vpack.c.bf16 %v80_v10, %v79_v8  ;;  %v191_v25 = vld [vmem:[%s392_s2] ss:$0 sm:$0xff]  ;;  %p273_p2 = scmp.ne.s32.totalorder %s178_s21, %s272_s3  ;;  %p278_p4 = scmp.lt.s32.totalorder %s272_s3, %s272_s3 }
  0x2a   :  { %56 = vadd.xlane.f32.xlu0 %v55_v4  ;;  %212 = vmatprep.subr.bf16.mxu0 %v211_v9 }
  0x2b   :  { %214 = vmatpush3.bf16.msra.mxu0 %v211_v9  ;;  %p279_p5 = por %p278_p4, %p277_p3 }
  0x2c   :  { %216 = vmatprep.subr.bf16.mxu0 %v215_v11 }
  0x2d   :  { %p280_p6 = pnand %p279_p5, %p273_p2 }
  0x2e   :  { %59 = vadd.xlane.f32.xlu0 %v58_v5 }
  0x2f   :  { %218 = vmatpush3.bf16.msra.mxu0 %v215_v11 }
  0xb7   :  { %v57_v12 = vpop.xlane.xlu0 %56 }
  0xb8   :  { %v61_v13 = vmul.f32 0.03125, %v57_v12 }
  0xba   :  { %v63_v14 = vadd.f32 1e-05, %v61_v13 }
  0xbb   :  { %v60_v15 = vpop.xlane.xlu0 %59 }
  0xbc   :  { %224 = vrsqrt.f32 %v63_v14  ;;  %v62_v16 = vmul.f32 0.03125, %v60_v15 }
  0xbe   :  { %v64_v17 = vadd.f32 1e-05, %v62_v16 }
  0xc0   :  { %226 = vrsqrt.f32 %v64_v17 }
  0xc6   :  { %v225_v18 = vpop.eup %224 }
  0xc7   :  { %v67_v20 = vmul.f32 %v225_v18, %v49_v0 }
  0xc9   :  { %v75_v21 = vmul.f32 %v190_v19, %v67_v20 }
  0xca   :  { %v227_v22 = vpop.eup %226 }
  0xcb   :  { %v68_v23 = vmul.f32 %v227_v22, %v50_v1  ;;  %208 = vmatprep.mubr.msk.f32.mxu0 %vm54_vm0, %v75_v21 }
  0xcd   :  { %v76_v24 = vmul.f32 %v190_v19, %v68_v23 }
  0xcf   :  { %209 = vmatmul.mubr.msk.f32.vlgmr.msra.gmra.mrb[0].mxu0 %vm54_vm0, %v76_v24 }
 0x1a2   :  { %v210_v26 = vpop.f32.mrb[0].mxu0 }
 0x1a3   :  { %v166_v27 = vadd.f32 %v210_v26, %v191_v25  ;;  %v160_v28 = vpop.f32.mrb[1].mxu0 }
 0x1a4   :  { %v161_v29 = vadd.f32 %v191_v25, %v160_v28 }
 0x1a5   :  { %171 = vst.msk [vmem:[#allocation7 + $0x8] sm:$0xff] %vm169_vm1, %v166_v27 }
 0x1a6   :  { %170 = vst.msk [vmem:[#allocation7] sm:$0xff] %vm169_vm1, %v161_v29 }
 0x1a7   :  { %283 = shalt.err (!%p280_p6)
}
 0x1a8   :  { %s284_s2 = scalar_lea.hbm %s395_s5, 256 }
 0x1a9   :  { %p285_p7 = scmp.ne.s32.totalorder %s395_s5, %s284_s2  ;;  %p288_p8 = scmp.lt.u32.totalorder %s284_s2, %s395_s5 }
 0x1ab   :  { %p290_p9 = pnand %p288_p8, %p285_p7 }
 0x1ad   :  { %293 = shalt.err (!%p290_p9)
}
 0x1ae   :  { %183 = dma.vmem_to_hbm [thread:$0]  %s178_s21, 256, %s395_s5, [#allocation4], %s301_s27, %s301_s27, %s302_s28  }
 0x1af   :  { %298 = dma.done.wait [#allocation4], 256  }
 0x1b0   :  { %299 = vsyncadd [#allocation4], 4294967040 }
 0x1b1   :  { %187 = vsyncpa [#allocation3], 1 }
 0x1b2   :  { %188 = vsyncpa [#allocation6], 1 }
 0x1b3   :  { %189 = vsyncpa [#allocation4], 1 }

</bundles_post_ra>
